<compile_context>
chip_gen: v7x
topology: tpu7x:2x2x1
jax: 0.10.0
libtpu: 0.0.40
codegen_flags: <defaults>
</compile_context>

<pallas_src>
import functools

import numpy as np
import jax
import jax.numpy as jnp
from jax import lax
from jax.experimental import pallas as pl
from jax.experimental.pallas import tpu as pltpu


def _round_up(x, m):
    return ((x + m - 1) // m) * m


# ---------------------------------------------------------------------------
# Kernel: per batch-tile, softmax( (x @ C^T)^2 * inv_norm , axis=-1 )
# ---------------------------------------------------------------------------
def _cluster_assignment_kernel(x_ref, c_ref, invn_ref, o_ref, *, num_valid_k):
    x = x_ref[...]            # (tb, D)  f32 batch tile
    c = c_ref[...]            # (Kp, D)  f32 centers (grid-invariant, resident)
    inv_norm = invn_ref[...]  # (1, Kp)  f32 precomputed 1/||c||, 0 in pad lanes

    # assignment = batch @ centers.T, contracting the last dim of both operands
    # so the [Kp, D] layout feeds the MXU directly (no transpose).
    a = lax.dot_general(
        x, c,
        dimension_numbers=(((1,), (1,)), ((), ())),
        preferred_element_type=jnp.float32,
    )                                           # (tb, Kp)
    a = a * a                                   # torch.pow(assignment, 2)
    s = a * inv_norm                            # ... / ||c||  (hoisted recip)

    # Mask padded cluster lanes so they contribute nothing to the softmax.
    if num_valid_k < s.shape[-1]:
        col = lax.broadcasted_iota(jnp.int32, s.shape, 1)
        s = jnp.where(col < num_valid_k, s, jnp.float32(-1e30))

    # Numerically stable softmax over clusters (last axis).
    s = s - jnp.max(s, axis=-1, keepdims=True)
    e = jnp.exp(s)
    denom = jnp.sum(e, axis=-1, keepdims=True)
    o_ref[...] = e * pl.reciprocal(denom, approx=True)


# ---------------------------------------------------------------------------
# Wrapper
# ---------------------------------------------------------------------------
def cluster_assignment_forward(batch, cluster_centers, *, max_tile=512):
    """batch: [B, D] f32, cluster_centers: [K, D] f32 -> [B, K] f32 soft assignments."""
    batch = jnp.asarray(batch, jnp.float32)
    cluster_centers = jnp.asarray(cluster_centers, jnp.float32)
    B, D = batch.shape
    K, D2 = cluster_centers.shape
    assert D == D2

    # Lane-dense output: pad cluster axis up to a multiple of 128.
    Kp = max(_round_up(K, 128), 128)

    # Batch tile: as large as a conservative VMEM budget allows (multiple of 8).
    def vmem_need(t):
        # double-buffered x tile + resident centers + double-buffered out + inv_norm
        return 2 * t * D * 4 + 2 * Kp * D * 4 + 2 * t * Kp * 4 + 2 * Kp * 4

    tb = min(max_tile, _round_up(B, 8))
    tb = max(8, (tb // 8) * 8)
    while tb > 8 and vmem_need(tb) > 24 * 1024 * 1024:   # fits v7x's 32 MiB scope
        tb = max(8, ((tb // 2) // 8) * 8)

    Bp = _round_up(B, tb)

    # Pad inputs (pad batch rows / pad center rows are sliced off the output).
    batch_p = batch if Bp == B else jnp.pad(batch, ((0, Bp - B), (0, 0)))
    centers_p = (cluster_centers if Kp == K
                 else jnp.pad(cluster_centers, ((0, Kp - K), (0, 0))))

    # Hoisted, grid-invariant: 1/||c|| per cluster (exact, f32), 0 in pad lanes.
    inv_norm = 1.0 / jnp.linalg.norm(cluster_centers, axis=-1)   # (K,)
    inv_norm = jnp.pad(inv_norm, (0, Kp - K)).reshape(1, Kp).astype(jnp.float32)

    cost = pl.CostEstimate(
        flops=2 * B * D * K + 4 * B * K,
        transcendentals=B * K,
        bytes_accessed=B * D * 4 + K * D * 4 + B * K * 4,
    )

    cp_kwargs = dict(dimension_semantics=("parallel",))
    need = vmem_need(tb) + (1 << 20)
    if need > 32 * 1024 * 1024:
        cp_kwargs["vmem_limit_bytes"] = need

    # NOTE: on v6e/v7x, casting the matmul operands to bf16 (keeping f32
    # accumulation) halves the batch DMA bytes; kept f32 here for exactness.
    out_padded = pl.pallas_call(
        functools.partial(_cluster_assignment_kernel, num_valid_k=K),
        out_shape=jax.ShapeDtypeStruct((Bp, Kp), jnp.float32),
        grid_spec=pltpu.PrefetchScalarGridSpec(
            num_scalar_prefetch=0,
            grid=(Bp // tb,),
            in_specs=[
                pl.BlockSpec((tb, D), lambda i: (i, 0)),    # batch tile
                pl.BlockSpec((Kp, D), lambda i: (0, 0)),    # centers (resident)
                pl.BlockSpec((1, Kp), lambda i: (0, 0)),    # 1/||c||  (resident)
            ],
            out_specs=pl.BlockSpec((tb, Kp), lambda i: (i, 0)),
        ),
        compiler_params=pltpu.CompilerParams(**cp_kwargs),
        cost_estimate=cost,
    )(batch_p, centers_p, inv_norm)

    return out_padded[:B, :K]


# ---------------------------------------------------------------------------
# Parameter init (glue, plain numpy/JAX): Xavier uniform + the module's
# Gram-Schmidt orthogonalization (orthogonal=True), matching the in-place
# semantics of the PyTorch __init__ (row 0 left unnormalized).
# ---------------------------------------------------------------------------
def init_cluster_centers(key, cluster_number, embedding_dimension):
    bound = float(np.sqrt(6.0 / (cluster_number + embedding_dimension)))
    init = jax.random.uniform(
        key, (cluster_number, embedding_dimension),
        minval=-bound, maxval=bound, dtype=jnp.float32)
    work = np.array(init, dtype=np.float32)
    orth = np.zeros_like(work)
    orth[0] = work[0]
    for i in range(1, cluster_number):
        proj = np.zeros((embedding_dimension,), dtype=np.float32)
        for j in range(i):
            u, v = work[j], work[i]
            proj = proj + (np.dot(u, v) / np.dot(u, u)) * u
        work[i] = work[i] - proj
        orth[i] = work[i] / np.linalg.norm(work[i])
    return jnp.asarray(orth, dtype=jnp.float32)


# Pure-JAX reference of the forward path for a sanity check.
def _reference_forward(batch, centers):
    a = (batch @ centers.T) ** 2
    norm = jnp.linalg.norm(centers, axis=-1)
    return jax.nn.softmax(a / norm, axis=-1)


if __name__ == "__main__":
    B, D, K = 16, 32, 4                       # batch, embedding dim, clusters
    key = jax.random.PRNGKey(0)
    k_c, k_x = jax.random.split(key)

    cluster_centers = init_cluster_centers(k_c, K, D)
    batch = jax.random.normal(k_x, (B, D), dtype=jnp.float32)

    out = cluster_assignment_forward(batch, cluster_centers)
    out = jax.block_until_ready(out)

    ref = _reference_forward(batch, cluster_centers)
    # tolerance accounts for the approximate (EUP) reciprocal in the softmax
    np.testing.assert_allclose(np.asarray(out), np.asarray(ref),
                               rtol=2e-3, atol=2e-3)

    # TODO(synk): the project_assignment=False (t-distribution) branch is not
    # exercised by the default config and is not implemented here.
    print("KERNEL_OK")
</pallas_src>

<mosaic_0001>
module attributes {stable_mosaic.version = 11 : i64} {
  func.func @_cluster_assignment_kernel(%arg0: i32, %arg1: memref<16x32xf32, #tpu.memory_space<vmem>>, %arg2: memref<128x32xf32, #tpu.memory_space<vmem>>, %arg3: memref<1x128xf32, #tpu.memory_space<vmem>>, %arg4: memref<16x128xf32, #tpu.memory_space<vmem>>) attributes {dimension_semantics = [#tpu.dimension_semantics<parallel>], iteration_bounds = array<i64: 1>, scalar_prefetch = 0 : i64, scratch_operands = 0 : i64, tpu.core_type = #tpu.core_type<tc>, window_params = [{transform_indices = @transform_0, window_bounds = array<i64: 16, 32>}, {pipeline_mode = #tpu.pipeline_mode<synchronous>, transform_indices = @transform_1, window_bounds = array<i64: 128, 32>}, {pipeline_mode = #tpu.pipeline_mode<synchronous>, transform_indices = @transform_2, window_bounds = array<i64: 1, 128>}, {transform_indices = @transform_3, window_bounds = array<i64: 16, 128>}]} {
    %c0 = arith.constant 0 : index
    %c0_0 = arith.constant 0 : index
    %0 = vector.load %arg1[%c0, %c0_0] : memref<16x32xf32, #tpu.memory_space<vmem>>, vector<16x32xf32>
    %c0_1 = arith.constant 0 : index
    %c0_2 = arith.constant 0 : index
    %1 = vector.load %arg2[%c0_1, %c0_2] : memref<128x32xf32, #tpu.memory_space<vmem>>, vector<128x32xf32>
    %c0_3 = arith.constant 0 : index
    %c0_4 = arith.constant 0 : index
    %2 = vector.load %arg3[%c0_3, %c0_4] : memref<1x128xf32, #tpu.memory_space<vmem>>, vector<1x128xf32>
    %cst = arith.constant dense<0.000000e+00> : vector<16x128xf32>
    %3 = tpu.matmul %0, %1, %cst {dimension_numbers = #tpu.dot_dimension_numbers<[1], [1], [0], [0], [0, 0, 1, 0], [], []>} : vector<16x32xf32>, vector<128x32xf32>, vector<16x128xf32> -> vector<16x128xf32>
    %4 = arith.mulf %3, %3 : vector<16x128xf32>
    %5 = vector.broadcast %2 : vector<1x128xf32> to vector<16x128xf32>
    %6 = arith.mulf %4, %5 : vector<16x128xf32>
    %7 = tpu.iota {dimensions = array<i32: 1>} : vector<16x128xi32>
    %c4_i32 = arith.constant 4 : i32
    %8 = vector.broadcast %c4_i32 : i32 to vector<16x128xi32>
    %9 = arith.cmpi slt, %7, %8 : vector<16x128xi32>
    %cst_5 = arith.constant -1.000000e+30 : f32
    %10 = vector.broadcast %cst_5 : f32 to vector<16x128xf32>
    %11 = arith.select %9, %6, %10 : vector<16x128xi1>, vector<16x128xf32>
    %cst_6 = arith.constant dense<0xFF800000> : vector<16xf32>
    %12 = vector.multi_reduction <maximumf>, %11, %cst_6 [1] : vector<16x128xf32> to vector<16xf32>
    %13 = vector.shape_cast %12 : vector<16xf32> to vector<16x1xf32>
    %14 = vector.broadcast %13 : vector<16x1xf32> to vector<16x128xf32>
    %15 = arith.subf %11, %14 : vector<16x128xf32>
    %16 = math.exp %15 : vector<16x128xf32>
    %cst_7 = arith.constant dense<0.000000e+00> : vector<16xf32>
    %17 = vector.multi_reduction <add>, %16, %cst_7 [1] : vector<16x128xf32> to vector<16xf32>
    %18 = vector.shape_cast %17 : vector<16xf32> to vector<16x1xf32>
    %19 = tpu.reciprocal %18 {approx = true} : vector<16x1xf32> -> vector<16x1xf32>
    %20 = vector.broadcast %19 : vector<16x1xf32> to vector<16x128xf32>
    %21 = arith.mulf %16, %20 : vector<16x128xf32>
    %c0_8 = arith.constant 0 : index
    %c0_9 = arith.constant 0 : index
    %22 = vector.load %arg4[%c0_8, %c0_9] : memref<16x128xf32, #tpu.memory_space<vmem>>, vector<16x128xf32>
    tpu.vector_store %arg4[%c0_8, %c0_9], %21 {strides = array<i32>} : memref<16x128xf32, #tpu.memory_space<vmem>>, vector<16x128xf32>,
    return
  }
  func.func @transform_0(%arg0: i32) -> (i32, i32) {
    %c0_i32 = arith.constant 0 : i32
    %c0_i32_0 = arith.constant 0 : i32
    return %arg0, %c0_i32 : i32, i32
  }
  func.func @transform_1(%arg0: i32) -> (i32, i32) {
    %c0_i32 = arith.constant 0 : i32
    %c0_i32_0 = arith.constant 0 : i32
    %c0_i32_1 = arith.constant 0 : i32
    return %c0_i32, %c0_i32_0 : i32, i32
  }
  func.func @transform_2(%arg0: i32) -> (i32, i32) {
    %c0_i32 = arith.constant 0 : i32
    %c0_i32_0 = arith.constant 0 : i32
    %c0_i32_1 = arith.constant 0 : i32
    return %c0_i32, %c0_i32_0 : i32, i32
  }
  func.func @transform_3(%arg0: i32) -> (i32, i32) {
    %c0_i32 = arith.constant 0 : i32
    %c0_i32_0 = arith.constant 0 : i32
    return %arg0, %c0_i32 : i32, i32
  }
}

</mosaic_0001>

<bundles_post_ra>
// kernel: tpu_custom_call.1
= control target key start
LH: loop header
LB: loop body
LE: loop exit
PB: predicated region body
PF: predicated region fallthrough
CT: control target
= control target key end

     0   :  { %vm34_vm0 = vcmask 261120   ;;  %s502_s0 = inlined_call_operand.vmem [shape: f32[16,32], index: 0, kind: input, shape index: {}]   ;;  %s503_s1 = inlined_call_operand.vmem [shape: f32[128,32], index: 1, kind: input, shape index: {}]   ;;  %s504_s2 = inlined_call_operand.vmem [shape: f32[1,128], index: 2, kind: input, shape index: {}]   ;;  %s505_s3 = inlined_call_operand.hbm [shape: f32[16,128], index: 3, kind: output, shape index: {}]  }
   0x1   :  { %v17_v0 = vld [vmem:[%s503_s1] sm:$0xff]  ;;  %v18_v1 = vld [vmem:[%s503_s1 + $0x8] sm:$0xff]  ;;  %v19_v2 = vld [vmem:[%s503_s1 + $0x10] sm:$0xff] }
   0x2   :  { %v287_v3 = vpack.c.bf16 %v18_v1, %v17_v0  ;;  %vm404_vm1 = vmpackc.low %vm34_vm0, %vm34_vm0  ;;  %v20_v5 = vld [vmem:[%s503_s1 + $0x18] sm:$0xff]  ;;  %v15_v7 = vld [vmem:[%s502_s0] sm:$0xff] }
   0x3   :  { %v293_v6 = vpack.c.bf16 %v20_v5, %v19_v2  ;;  %v21_v8 = vld [vmem:[%s503_s1 + $0x20] sm:$0xff]  ;;  %v22_v9 = vld [vmem:[%s503_s1 + $0x28] sm:$0xff]  ;;  %284 = vmatprep.mubr.msk.f32.mxu0 %vm34_vm0, %v15_v7 }
   0x4   :  { %289 = vmatprep.subr.msk.bf16.mxu0 %vm404_vm1, %v287_v3 }
   0x5   :  { %292 = vmatpush3.bf16.xpose.msk.msra.mxu0 %vm404_vm1, %v287_v3 }
   0x6   :  { %295 = vmatprep.subr.msk.bf16.mxu0 %vm404_vm1, %v293_v6 }
   0x7   :  { %8 = vsyncpa [#allocation3], 0  ;;  %v299_v10 = vpack.c.bf16 %v22_v9, %v21_v8  ;;  %v23_v11 = vld [vmem:[%s503_s1 + $0x30] sm:$0xff]  ;;  %v24_v12 = vld [vmem:[%s503_s1 + $0x38] sm:$0xff]  ;;  %v174_v27 = vlaneseq }
   0x8   :  { %v305_v13 = vpack.c.bf16 %v24_v12, %v23_v11  ;;  %v25_v14 = vld [vmem:[%s503_s1 + $0x40] sm:$0xff]  ;;  %v26_v15 = vld [vmem:[%s503_s1 + $0x48] sm:$0xff]  ;;  %v27_v17 = vld [vmem:[%s503_s1 + $0x50] sm:$0xff] }
   0x9   :  { %v311_v16 = vpack.c.bf16 %v26_v15, %v25_v14  ;;  %v28_v18 = vld [vmem:[%s503_s1 + $0x58] sm:$0xff]  ;;  %v29_v20 = vld [vmem:[%s503_s1 + $0x60] sm:$0xff]  ;;  %v30_v21 = vld [vmem:[%s503_s1 + $0x68] sm:$0xff]  ;;  %v175_v28 = vand.u32 127, %v174_v27 }
   0xa   :  { %v317_v19 = vpack.c.bf16 %v28_v18, %v27_v17  ;;  %v323_v22 = vpack.c.bf16 %v30_v21, %v29_v20  ;;  %v31_v23 = vld [vmem:[%s503_s1 + $0x70] sm:$0xff]  ;;  %v32_v24 = vld [vmem:[%s503_s1 + $0x78] sm:$0xff]  ;;  %v16_v26 = vld [vmem:[%s502_s0 + $0x8] sm:$0xff]  ;;  %s370_s0 = smov [#allocation2]  }
   0xb   :  { %v329_v25 = vpack.c.bf16 %v32_v24, %v31_v23  ;;  %v233_v30 = vld [vmem:[%s504_s2] ss:$0 sm:$0xff]  ;;  %vm176_vm2 = vcmp.lt.s32.totalorder %v175_v28, 4  ;;  %s204_s2 = sshll.u32 %s370_s0, 4  ;;  %s205_s2 = int_to_ptr.vmem [resolvable:$true] %s204_s2 }
   0xc   :  { %s346_s22 = scalar_lea.vmem %s205_s2, 256  ;;  %p351_p1 = scmp.lt.s32.totalorder %s205_s2, %s205_s2 }
   0xd   :  { %298 = vmatpush3.bf16.xpose.msk.msra.mxu0 %vm404_vm1, %v293_v6  ;;  %p347_p0 = scmp.ne.s32.totalorder %s205_s2, %s346_s22  ;;  %p352_p2 = scmp.lt.s32.totalorder %s346_s22, %s346_s22 }
   0xe   :  { %301 = vmatprep.subr.msk.bf16.mxu0 %vm404_vm1, %v299_v10 }
   0xf   :  { %p353_p3 = por %p352_p2, %p351_p1 }
  0x11   :  { %p354_p4 = pnand %p353_p3, %p347_p0 }
  0x15   :  { %304 = vmatpush3.bf16.xpose.msk.msra.mxu0 %vm404_vm1, %v299_v10 }
  0x16   :  { %307 = vmatprep.subr.msk.bf16.mxu0 %vm404_vm1, %v305_v13 }
  0x1d   :  { %310 = vmatpush3.bf16.xpose.msk.msra.mxu0 %vm404_vm1, %v305_v13 }
  0x1e   :  { %313 = vmatprep.subr.msk.bf16.mxu0 %vm404_vm1, %v311_v16 }
  0x25   :  { %316 = vmatpush3.bf16.xpose.msk.msra.mxu0 %vm404_vm1, %v311_v16 }
  0x26   :  { %319 = vmatprep.subr.msk.bf16.mxu0 %vm404_vm1, %v317_v19 }
  0x2d   :  { %322 = vmatpush3.bf16.xpose.msk.msra.mxu0 %vm404_vm1, %v317_v19 }
  0x2e   :  { %325 = vmatprep.subr.msk.bf16.mxu0 %vm404_vm1, %v323_v22 }
  0x35   :  { %328 = vmatpush3.bf16.xpose.msk.msra.mxu0 %vm404_vm1, %v323_v22 }
  0x36   :  { %331 = vmatprep.subr.msk.bf16.mxu0 %vm404_vm1, %v329_v25 }
  0x3d   :  { %334 = vmatpush3.bf16.xpose.msk.msra.mxu0 %vm404_vm1, %v329_v25 }
  0x44   :  { %285 = vmatmul.mubr.msk.f32.vlgmr.msra.gmra.mrb[0].mxu0 %vm34_vm0, %v16_v26 }
 0x117   :  { %v286_v29 = vpop.f32.mrb[0].mxu0 }
 0x118   :  { %v155_v31 = vpop.f32.mrb[1].mxu0  ;;  %v165_v32 = vmul.f32 %v286_v29, %v286_v29 }
 0x119   :  { %v164_v33 = vmul.f32 %v155_v31, %v155_v31 }
 0x11a   :  { %v173_v36 = vmul.f32 %v233_v30, %v165_v32 }
 0x11b   :  { %v172_v34 = vmul.f32 %v233_v30, %v164_v33 }
 0x11c   :  { %v178_v37 = vsel %vm176_vm2, %v173_v36, -1e+30 }
 0x11d   :  { %v177_v35 = vsel %vm176_vm2, %v172_v34, -1e+30 }
 0x11e   :  { %179 = vmax.xlane.f32.xlu0 %v177_v35 }
 0x122   :  { %181 = vmax.xlane.f32.xlu0 %v178_v37 }
 0x1ab   :  { %v180_v38 = vpop.xlane.xlu0 %179 }
 0x1ac   :  { %v183_v39 = vsub.f32 %v177_v35, %v180_v38 }
 0x1ae   :  { %v185_v40 = vmul.f32 1.442695, %v183_v39 }
 0x1af   :  { %v182_v41 = vpop.xlane.xlu0 %181 }
 0x1b0   :  { %338 = vpow2.f32 %v185_v40  ;;  %v184_v42 = vsub.f32 %v178_v37, %v182_v41 }
 0x1b2   :  { %v187_v43 = vmul.f32 1.442695, %v184_v42 }
 0x1b4   :  { %340 = vpow2.f32 %v187_v43 }
 0x1ba   :  { %v339_v44 = vpop.eup %338 }
 0x1bb   :  { %189 = vadd.xlane.f32.xlu1 %v339_v44 }
 0x1be   :  { %v341_v45 = vpop.eup %340 }
 0x1bf   :  { %191 = vadd.xlane.f32.xlu1 %v341_v45 }
 0x248   :  { %v190_v46 = vpop.xlane.xlu1 %189 }
 0x249   :  { %342 = vrcp.f32 %v190_v46 }
 0x24c   :  { %v192_v47 = vpop.xlane.xlu1 %191 }
 0x24d   :  { %344 = vrcp.f32 %v192_v47 }
 0x253   :  { %v343_v48 = vpop.eup %342 }
 0x254   :  { %v195_v49 = vmul.f32 %v343_v48, %v339_v44 }
 0x256   :  { %197 = vst [vmem:[#allocation2] sm:$0xff] %v195_v49 }
 0x257   :  { %v345_v50 = vpop.eup %344 }
 0x258   :  { %v196_v51 = vmul.f32 %v345_v50, %v341_v45 }
 0x25a   :  { %198 = vst [vmem:[#allocation2 + $0x8] sm:$0xff] %v196_v51 }
 0x25b   :  { %357 = shalt.err (!%p354_p4)
}
 0x25c   :  { %s358_s25 = scalar_lea.hbm %s505_s3, 256 }
 0x25d   :  { %p359_p5 = scmp.ne.s32.totalorder %s505_s3, %s358_s25  ;;  %p362_p6 = scmp.lt.u32.totalorder %s358_s25, %s505_s3 }
 0x25f   :  { %p364_p7 = pnand %p362_p6, %p359_p5 }
 0x261   :  { %367 = shalt.err (!%p364_p7)
}
 0x262   :  { %s371_s30 = smov 128   ;;  %s372_s4 = smov 8  }
 0x263   :  { %210 = dma.vmem_to_hbm [thread:$0]  %s205_s2, 256, %s505_s3, [#allocation3], %s371_s30, %s371_s30, %s372_s4  }
 0x264   :  { %368 = dma.done.wait [#allocation3], 256  }
 0x265   :  { %369 = vsyncadd [#allocation3], 4294967040 }
 0x266   :  { %214 = vsyncpa [#allocation3], 1 }

</bundles_post_ra>
